<compile_context>
chip_gen: v6e
topology: v6e:2x2x1
jax: 0.10.0
libtpu: 0.0.40
codegen_flags: <defaults>
</compile_context>

<pallas_src>
import functools

import jax
import jax.numpy as jnp
from jax import lax
from jax.experimental import pallas as pl
from jax.experimental.pallas import tpu as pltpu


_HI = jax.lax.Precision.HIGHEST


def _round_up(x, m):
    return -(-x // m) * m


def _mm(a, b):
    # f32 matmul on the (otherwise idle) MXU; HIGHEST keeps the sums ~f32 exact.
    return jnp.dot(a, b, preferred_element_type=jnp.float32, precision=_HI)


def _pool_mats(rp, tile_h, nw, W, p):
    """0/1 patch-pooling matrices (and their expansion counterparts) from 2-D iotas."""
    ri = lax.broadcasted_iota(jnp.int32, (rp, tile_h), 0)
    rr = lax.broadcasted_iota(jnp.int32, (rp, tile_h), 1)
    Q = ((rr >= ri * p) & (rr < (ri + 1) * p)).astype(jnp.float32)      # (rp, tile_h)
    cw = lax.broadcasted_iota(jnp.int32, (W, nw), 0)
    cj = lax.broadcasted_iota(jnp.int32, (W, nw), 1)
    P = ((cw >= cj * p) & (cw < (cj + 1) * p)).astype(jnp.float32)      # (W, nw)
    # Expansion (nearest-neighbour un-pooling) matrices built directly -> no in-kernel transpose.
    er = lax.broadcasted_iota(jnp.int32, (tile_h, rp), 0)
    ei = lax.broadcasted_iota(jnp.int32, (tile_h, rp), 1)
    Qe = ((er >= ei * p) & (er < (ei + 1) * p)).astype(jnp.float32)     # (tile_h, rp)
    ej = lax.broadcasted_iota(jnp.int32, (nw, W), 0)
    ew = lax.broadcasted_iota(jnp.int32, (nw, W), 1)
    Pe = ((ew >= ej * p) & (ew < (ej + 1) * p)).astype(jnp.float32)     # (nw, W)
    return Q, P, Qe, Pe


def _patch_l1_kernel(inp_ref, tgt_ref, out_ref, *, p, norm_pix, eps):
    """Per-patch sums of |input - target| (channels + p x p pixels) for one batch / row-strip.

    inp_ref, tgt_ref: (1, C, tile_h, W); out_ref: (1, 1, tile_h//p, W//p) f32.
    When norm_pix=True the MAE-style per-patch target normalisation is fused in.
    """
    x = inp_ref[0].astype(jnp.float32)            # (C, tile_h, W)
    t = tgt_ref[0].astype(jnp.float32)
    C, tile_h, W = x.shape
    rp, nw = tile_h // p, W // p
    Q, P, Qe, Pe = _pool_mats(rp, tile_h, nw, W, p)

    def pool(z):      # (tile_h, W) -> (rp, nw): sum over each p x p patch (MXU)
        return _mm(_mm(Q, z), P)

    def unpool(z):    # (rp, nw) -> (tile_h, W): nearest-neighbour expansion (MXU)
        return _mm(Qe, _mm(z, Pe))

    if norm_pix:
        n = C * p * p
        mean = pool(jnp.sum(t, axis=0)) * (1.0 / n)             # per-patch mean over (c,p1,p2)
        t = t - unpool(mean)[None]                              # centred target (two-pass var)
        var = pool(jnp.sum(t * t, axis=0)) * (1.0 / (n - 1))    # unbiased, matches torch.var
        t = t * unpool(lax.rsqrt(var + eps))[None]

    d = jnp.sum(jnp.abs(x - t), axis=0)                         # (tile_h, W) channel-summed |diff|
    out_ref[0, 0] = pool(d)


def _vmem_plan():
    """(per-block byte budget, explicit scoped-VMEM limit) chosen per TPU generation."""
    try:
        cap = pltpu.get_tpu_info().vmem_capacity_bytes
    except Exception:
        cap = 64 << 20                       # conservative default if the query is unavailable
    if cap >= (100 << 20):                   # v5e / v6e: 128 MiB physical VMEM
        return 4 << 20, 64 << 20
    return 2 << 20, 32 << 20                 # v7x: 64 MiB physical VMEM


def _pick_tile_h(H, p, C, W, itemsize, budget_bytes):
    """Largest tile height that divides H, is a whole number of patch rows, is sublane-aligned
    (multiple of 8 or full H), and keeps one (1, C, tile_h, W) block under the VMEM budget."""
    nh = H // p
    w_pad = _round_up(W, 128)

    def blk_bytes(th):
        return C * _round_up(th, 8) * w_pad * itemsize

    cands = [p * r for r in range(1, nh + 1) if nh % r == 0]
    aligned = [th for th in cands if th % 8 == 0 or th == H]
    within = [th for th in aligned if blk_bytes(th) <= budget_bytes]
    if within:
        return max(within)
    if aligned:
        # TODO(synk): even one aligned strip of patch rows busts the per-block budget (very wide
        # / many-channel images); fall back to the smallest aligned strip and rely on the
        # explicit vmem_limit_bytes headroom instead of also tiling columns.
        return min(aligned)
    return H


def masked_l1_loss(input, target, mask=None, *, patch_size=16, stride=1,
                   norm_pix=False, tile_h=None, eps=1e-6):
    """JAX/Pallas equivalent of MaskedL1Loss.forward (NCHW input/target, (B, nh*nw) mask)."""
    B, C, H, W = input.shape
    p = patch_size // stride
    assert H % p == 0 and W % p == 0, "spatial dims must be divisible by the scale factor"
    nh, nw = H // p, W // p

    budget, vmem_limit = _vmem_plan()
    if tile_h is None:
        tile_h = _pick_tile_h(H, p, C, W, input.dtype.itemsize, budget)
    assert H % tile_h == 0 and tile_h % p == 0
    assert tile_h % 8 == 0 or tile_h == H, "tile_h must be sublane-aligned or the full height"
    rp = tile_h // p
    n_tiles = H // tile_h

    kernel = functools.partial(_patch_l1_kernel, p=p, norm_pix=norm_pix, eps=eps)
    cost = pl.CostEstimate(
        flops=(8 if norm_pix else 3) * B * C * H * W,
        transcendentals=B * nh * nw if norm_pix else 0,
        bytes_accessed=(input.size * input.dtype.itemsize
                        + target.size * target.dtype.itemsize + B * nh * nw * 4))

    patch_sums = pl.pallas_call(
        kernel,
        out_shape=jax.ShapeDtypeStruct((B, n_tiles, rp, nw), jnp.float32),
        grid=(B, n_tiles),
        in_specs=[pl.BlockSpec((1, C, tile_h, W), lambda b, t: (b, 0, t, 0)),
                  pl.BlockSpec((1, C, tile_h, W), lambda b, t: (b, 0, t, 0))],
        out_specs=pl.BlockSpec((1, 1, rp, nw), lambda b, t: (b, t, 0, 0)),
        compiler_params=pltpu.CompilerParams(
            dimension_semantics=("parallel", "parallel"),
            vmem_limit_bytes=vmem_limit),
        cost_estimate=cost,
    )(input, target)
    patch_sums = patch_sums.reshape(B, nh, nw)            # free reshape (contiguous tiles)

    if mask is None:
        return jnp.sum(patch_sums) / jnp.float32(B * C * H * W)     # global mean

    m = mask.reshape(B, nh, nw).astype(jnp.float32)
    num = jnp.sum(patch_sums * m, axis=(1, 2)) / jnp.float32(C)     # sum(mask_up * mean_C|diff|)
    den = jnp.float32(p * p) * jnp.sum(m, axis=(1, 2))              # sum(mask_up)
    per_batch = num / den                                           # 0/0 -> nan for empty masks
    loss = jnp.nanmean(per_batch)                                   # matches loss.nanmean()
    # PyTorch's `if mask.sum() == 0: return 0` is data-dependent; resolve with a select.
    return jnp.where(jnp.sum(m) == 0, jnp.float32(0.0), loss)


def _masked_l1_loss_ref(input, target, mask=None, *, patch_size=16, stride=1, norm_pix=False):
    """Pure-JAX mirror of the PyTorch reference, for correctness checking."""
    B, C, H, W = input.shape
    p = patch_size // stride
    nh, nw = H // p, W // p
    if norm_pix:
        t = target.reshape(B, C, nh, p, nw, p)
        t = jnp.transpose(t, (0, 2, 4, 3, 5, 1)).reshape(B, nh * nw, p * p * C)
        mean = jnp.mean(t, axis=-1, keepdims=True)
        var = jnp.var(t, axis=-1, keepdims=True, ddof=1)
        t = (t - mean) / jnp.sqrt(var + 1e-6)
        t = t.reshape(B, nh, nw, p, p, C)
        target = jnp.transpose(t, (0, 5, 1, 3, 2, 4)).reshape(B, C, H, W)
    loss = jnp.abs(input - target)
    if mask is None:
        return jnp.mean(loss)
    m = mask.reshape(B, nh, nw).astype(jnp.float32)
    m_up = jnp.repeat(jnp.repeat(m, p, axis=1), p, axis=2)          # nearest upsample
    lhw = jnp.mean(loss, axis=1) * m_up
    per = lhw.reshape(B, -1).sum(axis=1) / m_up.reshape(B, -1).sum(axis=1)
    out = jnp.nanmean(per)
    return jnp.where(jnp.sum(m) == 0, jnp.float32(0.0), out)


if __name__ == "__main__":
    key = jax.random.PRNGKey(0)
    B, C, H, W = 2, 4, 32, 32
    patch_size, stride = 8, 1                 # scale factor p = 8 -> nh = nw = 4
    p = patch_size // stride
    nh, nw = H // p, W // p

    k1, k2, k3 = jax.random.split(key, 3)
    x = jax.random.normal(k1, (B, C, H, W), dtype=jnp.float32)
    t = jax.random.normal(k2, (B, C, H, W), dtype=jnp.float32)
    mask = (jax.random.uniform(k3, (B, nh * nw)) > 0.5).astype(jnp.float32)
    zero_mask = jnp.zeros((B, nh * nw), jnp.float32)

    # tile_h=16 -> 2 row-strip tiles, exercising the second (parallel) grid axis.
    cases = [
        ("masked_tiled",  mask,      False, 16),
        ("masked_auto",   mask,      False, None),
        ("no_mask",       None,      False, 16),
        ("norm_pix",      mask,      True,  16),
        ("norm_pix_auto", mask,      True,  None),
        ("empty_mask",    zero_mask, False, None),
    ]
    results = []
    for name, mk, np_, th in cases:
        got = masked_l1_loss(x, t, mk, patch_size=patch_size, stride=stride,
                             norm_pix=np_, tile_h=th)
        ref = _masked_l1_loss_ref(x, t, mk, patch_size=patch_size, stride=stride, norm_pix=np_)
        results.append((name, got, ref))

    jax.block_until_ready(results)
    for name, got, ref in results:
        assert abs(float(got) - float(ref)) < 2e-4, (name, float(got), float(ref))
    print("KERNEL_OK")
</pallas_src>

<mosaic_0001>
module attributes {stable_mosaic.version = 11 : i64} {
  func.func @_patch_l1_kernel(%arg0: i32, %arg1: i32, %arg2: memref<1x4x16x32xf32, #tpu.memory_space<vmem>>, %arg3: memref<1x4x16x32xf32, #tpu.memory_space<vmem>>, %arg4: memref<1x1x2x4xf32, #tpu.memory_space<vmem>>) attributes {dimension_semantics = [#tpu.dimension_semantics<parallel>, #tpu.dimension_semantics<parallel>], iteration_bounds = array<i64: 2, 2>, scalar_prefetch = 0 : i64, scratch_operands = 0 : i64, tpu.core_type = #tpu.core_type<tc>, window_params = [{transform_indices = @transform_0, window_bounds = array<i64: 1, 4, 16, 32>}, {transform_indices = @transform_1, window_bounds = array<i64: 1, 4, 16, 32>}, {transform_indices = @transform_2, window_bounds = array<i64: 1, 1, 2, 4>}]} {
    %c0 = arith.constant 0 : index
    %c0_0 = arith.constant 0 : index
    %c0_1 = arith.constant 0 : index
    %c0_2 = arith.constant 0 : index
    %0 = vector.load %arg2[%c0, %c0_0, %c0_1, %c0_2] : memref<1x4x16x32xf32, #tpu.memory_space<vmem>>, vector<1x4x16x32xf32>
    %1 = vector.shape_cast %0 : vector<1x4x16x32xf32> to vector<4x16x32xf32>
    %c0_3 = arith.constant 0 : index
    %c0_4 = arith.constant 0 : index
    %c0_5 = arith.constant 0 : index
    %c0_6 = arith.constant 0 : index
    %2 = vector.load %arg3[%c0_3, %c0_4, %c0_5, %c0_6] : memref<1x4x16x32xf32, #tpu.memory_space<vmem>>, vector<1x4x16x32xf32>
    %3 = vector.shape_cast %2 : vector<1x4x16x32xf32> to vector<4x16x32xf32>
    %4 = tpu.iota {dimensions = array<i32: 0>} : vector<2x16xi32>
    %5 = tpu.iota {dimensions = array<i32: 1>} : vector<2x16xi32>
    %c8_i32 = arith.constant 8 : i32
    %6 = vector.broadcast %c8_i32 : i32 to vector<2x16xi32>
    %7 = arith.muli %4, %6 : vector<2x16xi32>
    %8 = arith.cmpi sge, %5, %7 : vector<2x16xi32>
    %c1_i32 = arith.constant 1 : i32
    %9 = vector.broadcast %c1_i32 : i32 to vector<2x16xi32>
    %10 = arith.addi %4, %9 : vector<2x16xi32>
    %c8_i32_7 = arith.constant 8 : i32
    %11 = vector.broadcast %c8_i32_7 : i32 to vector<2x16xi32>
    %12 = arith.muli %10, %11 : vector<2x16xi32>
    %13 = arith.cmpi slt, %5, %12 : vector<2x16xi32>
    %14 = arith.andi %8, %13 : vector<2x16xi1>
    %15 = arith.extui %14 : vector<2x16xi1> to vector<2x16xi32>
    %16 = arith.sitofp %15 : vector<2x16xi32> to vector<2x16xf32>
    %17 = tpu.iota {dimensions = array<i32: 0>} : vector<32x4xi32>
    %18 = tpu.iota {dimensions = array<i32: 1>} : vector<32x4xi32>
    %c8_i32_8 = arith.constant 8 : i32
    %19 = vector.broadcast %c8_i32_8 : i32 to vector<32x4xi32>
    %20 = arith.muli %18, %19 : vector<32x4xi32>
    %21 = arith.cmpi sge, %17, %20 : vector<32x4xi32>
    %c1_i32_9 = arith.constant 1 : i32
    %22 = vector.broadcast %c1_i32_9 : i32 to vector<32x4xi32>
    %23 = arith.addi %18, %22 : vector<32x4xi32>
    %c8_i32_10 = arith.constant 8 : i32
    %24 = vector.broadcast %c8_i32_10 : i32 to vector<32x4xi32>
    %25 = arith.muli %23, %24 : vector<32x4xi32>
    %26 = arith.cmpi slt, %17, %25 : vector<32x4xi32>
    %27 = arith.andi %21, %26 : vector<32x4xi1>
    %28 = arith.extui %27 : vector<32x4xi1> to vector<32x4xi32>
    %29 = arith.sitofp %28 : vector<32x4xi32> to vector<32x4xf32>
    %30 = arith.subf %1, %3 : vector<4x16x32xf32>
    %31 = math.absf %30 : vector<4x16x32xf32>
    %cst = arith.constant dense<0.000000e+00> : vector<16x32xf32>
    %32 = vector.multi_reduction <add>, %31, %cst [0] : vector<4x16x32xf32> to vector<16x32xf32>
    %cst_11 = arith.constant dense<0.000000e+00> : vector<2x32xf32>
    %33 = tpu.matmul %16, %32, %cst_11 {dimension_numbers = #tpu.dot_dimension_numbers<[1], [0], [0], [1], [0, 0, 1, 1], [], []>, precision = #tpu.contract_precision<fp32>} : vector<2x16xf32>, vector<16x32xf32>, vector<2x32xf32> -> vector<2x32xf32>
    %cst_12 = arith.constant dense<0.000000e+00> : vector<2x4xf32>
    %34 = tpu.matmul %33, %29, %cst_12 {dimension_numbers = #tpu.dot_dimension_numbers<[1], [0], [0], [1], [0, 0, 1, 1], [], []>, precision = #tpu.contract_precision<fp32>} : vector<2x32xf32>, vector<32x4xf32>, vector<2x4xf32> -> vector<2x4xf32>
    %c0_13 = arith.constant 0 : index
    %c0_14 = arith.constant 0 : index
    %c0_15 = arith.constant 0 : index
    %c0_16 = arith.constant 0 : index
    %35 = vector.load %arg4[%c0_13, %c0_14, %c0_15, %c0_16] : memref<1x1x2x4xf32, #tpu.memory_space<vmem>>, vector<1x1x2x4xf32>
    %36 = vector.shape_cast %35 : vector<1x1x2x4xf32> to vector<2x4xf32>
    %37 = vector.shape_cast %34 : vector<2x4xf32> to vector<1x1x2x4xf32>
    tpu.vector_store %arg4[%c0_13, %c0_14, %c0_15, %c0_16], %37 {strides = array<i32>} : memref<1x1x2x4xf32, #tpu.memory_space<vmem>>, vector<1x1x2x4xf32>,
    return
  }
  func.func @transform_0(%arg0: i32, %arg1: i32) -> (i32, i32, i32, i32) {
    %c0_i32 = arith.constant 0 : i32
    %c0_i32_0 = arith.constant 0 : i32
    %c0_i32_1 = arith.constant 0 : i32
    return %arg0, %c0_i32, %arg1, %c0_i32_0 : i32, i32, i32, i32
  }
  func.func @transform_1(%arg0: i32, %arg1: i32) -> (i32, i32, i32, i32) {
    %c0_i32 = arith.constant 0 : i32
    %c0_i32_0 = arith.constant 0 : i32
    %c0_i32_1 = arith.constant 0 : i32
    return %arg0, %c0_i32, %arg1, %c0_i32_0 : i32, i32, i32, i32
  }
  func.func @transform_2(%arg0: i32, %arg1: i32) -> (i32, i32, i32, i32) {
    %c0_i32 = arith.constant 0 : i32
    %c0_i32_0 = arith.constant 0 : i32
    %c0_i32_1 = arith.constant 0 : i32
    return %arg0, %arg1, %c0_i32, %c0_i32_0 : i32, i32, i32, i32
  }
}

</mosaic_0001>

<bundles_post_ra>
// kernel: tpu_custom_call.1
= control target key start
LH: loop header
LB: loop body
LE: loop exit
PB: predicated region body
PF: predicated region fallthrough
CT: control target
= control target key end

     0   :  { %7 = vsyncpa [#allocation3], 0  ;;  %s2281_s0 = inlined_call_operand.hbm [shape: f32[2,4,32,32], index: 0, kind: input, shape index: {}]   ;;  %s2282_s1 = inlined_call_operand.hbm [shape: f32[2,4,32,32], index: 1, kind: input, shape index: {}]   ;;  %s2283_s2 = inlined_call_operand.hbm [shape: f32[2,2,2,4], index: 2, kind: output, shape index: {}]  }
   0x1   :  { %9 = vsyncpa [#allocation3 + $0x1], 0 }
   0x2   :  { %10 = vsyncpa [#allocation6], 0 }
   0x3   :  { %12 = vsyncpa [#allocation6 + $0x1], 0 }
   0x4   :  { %13 = vsyncpa [#allocation4], 0 }
   0x5   :  { %15 = vsyncpa [#allocation4 + $0x1], 0  ;;  %s1880_s9 = smov 0   ;;  %s1882_s10 = smov 0  }
   0x6   :  { %s1884_s11 = smov 0   ;;  %s1886_s12 = smov 0  }
   0x7   :  { %s1888_s13 = smov 0   ;;  %s1890_s14 = smov 0  }
   0x8   :  { %s1892_s15 = smov 0   ;;  %s1894_s16 = smov 0  }
   0x9 LB: > { %s1442_s17 = sadd.s32 4294967295, %s1847_s16   ;;  %s1443_s18 = sadd.s32 4294967294, %s1847_s16   ;;  %s1847_s16 = sphi %s1894_s16, %s21_s16   ;;  %s1843_s15 = sphi %s1892_s15, %s2314_s15   ;;  %s1839_s14 = sphi %s1890_s14, %s2313_s14   ;;  %s1835_s13 = sphi %s1888_s13, %s2312_s13   ;;  %s1831_s12 = sphi %s1886_s12, %s2311_s12   ;;  %s1827_s11 = sphi %s1884_s11, %s2310_s11   ;;  %s1823_s10 = sphi %s1882_s10, %s2309_s10   ;;  %s1819_s9 = sphi %s1880_s9, %s2308_s9  }
   0xa   : > { %s30_s19 = sadd.s32 1, %s1839_s14  ;;  %s33_s20 = sadd.s32 1, %s1843_s15 }
   0xb   : > { %p31_p0 = scmp.ge.s32.totalorder %s30_s19, 2  ;;  %p49_p1 = scmp.ne.s32.totalorder %s1827_s11, %s1823_s10 }
   0xc   : > { %p50_p2 = scmp.eq.s32.totalorder %s1847_s16, 0  ;;  %p55_p5 = scmp.ne.s32.totalorder %s1823_s10, %s1819_s9 }
   0xd   : > { %s2316_s19 = smov (%p31_p0, %s30_s19), 0  ;;  %s2318_s20 = smov (!%p31_p0, %s33_s20), %s1843_s15 }
   0xe   : > { %2287 = sst [smem:[#allocation17_spill]] %s2316_s19  ;;  %s38_s21 = ssub.s32 %s1839_s14, %s2316_s19 }
   0xf   : > { %p1932_p3 = por %p50_p2, %p49_p1  ;;  %p35_p4 = scmp.ge.s32.totalorder %s2318_s20, 2 }
  0x10   : > { %p56_p6 = scmp.eq.s32.totalorder %s1442_s17, 0  ;;  %p109_p7 = scmp.eq.s32.totalorder %s1442_s17, 3 }
  0x11   : > { %s2320_s20 = smov (%p35_p4, %s2318_s20), 0  ;;  %p115_p10 = scmp.eq.s32.totalorder %s1443_s18, 3 }
  0x12   : > { %2289 = sst [smem:[#allocation18_spill]] %s2320_s20  ;;  %p1940_p8 = por %p56_p6, %p55_p5 }
  0x13   : > { %p1944_p9 = por %p109_p7, %p49_p1  ;;  %s37_s25 = ssub.s32 %s1843_s15, %s2320_s20 }
  0x14   : > { %s39_s26 = sor.u32 %s38_s21, %s37_s25  ;;  %s42_s27 = sadd.s32 1, %s1827_s11 }
  0x15   : > { %p40_p11 = scmp.eq.s32.totalorder %s39_s26, 0  ;;  %p1951_p12 = por %p115_p10, %p55_p5 }
  0x16   : > { %p1445_p13 = scmp.ge.s32.totalorder %s1847_s16, 4 }
  0x17   : > { %s1956_s29 = scalar_select %p40_p11, %s1827_s11, %s42_s27  }
  0x18   : > { %131 = sbr.rel (%p1445_p13) target bundleno = 57 (0x39), region = 16 }
  0x1d   : > { %s1960_s30 = sand.u32 1, %s1827_s11   ;;  %s1447_s3 = sshll.u32 %s1839_s14, 1 }
  0x1e   : > { %s2284_s4 = sshll.u32 %s1960_s30, 6  ;;  %s1448_s5 = sshll.u32 %s1843_s15, 4 }
  0x1f   : > { %s145_s6 = sadd.s32 %s1448_s5, %s1447_s3  ;;  %s139_s7 = scalar_lea.vmem [#allocation2], %s2284_s4 }
  0x20   : > { %s160_s8 = sshll.u32 %s139_s7, 4  ;;  %s1449_s17 = sshll.u32 %s145_s6, 7  ;;  %s161_s8 = int_to_ptr.vmem [resolvable:$true] %s160_s8 }
  0x21   : > { %s1643_s18 = scalar_select %p1932_p3, [#allocation0], [#allocation12] }
  0x22   : > { %s1849_s21 = smov 512   ;;  %s1850_s26 = smov 256  }
  0x23   : > { %1644 = sst [smem:[#allocation9]] (%p1932_p3), %s1849_s21  ;;  %s1851_s27 = smov 2  }
  0x24   : > { %s152_s25 = sld [smem:[%s1643_s18]]   ;;  %s1852_s3 = smov 128  }
  0x25   : > { %1645 = sst [smem:[#allocation9 + $0x1]] (%p1932_p3), %s1850_s26  ;;  %s147_s7 = scalar_lea.hbm %s2281_s0, %s1449_s17 }
  0x26   : > { %1646 = sst [smem:[#allocation9 + $0x2]] (%p1932_p3), %s1851_s27  ;;  %s1853_s4 = smov 8  }
  0x27   : > { %1647 = sst [smem:[#allocation9 + $0x3]] (%p1932_p3), %s1852_s3  ;;  %s136_s20 = scalar_lea.sflag [#allocation3], %s1960_s30 }
  0x28   : > { %1648 = sst [smem:[#allocation9 + $0x4]] (%p1932_p3), %s1852_s3  ;;  %s1854_s26 = smov 131072  }
  0x29   : > { %1649 = sst [smem:[#allocation9 + $0x5]] (%p1932_p3), %s1853_s4 }
  0x2a   : > { %s1450_s18 = sshll.u32 %s152_s25, 26 }
  0x2b   : > { %s1451_s21 = sadd.s32 134217728, %s1450_s18 }
  0x2c   : > { %1650 = dma.general (%p1932_p3), %s147_s7, 1024, %s161_s8, %s136_s20, %s1854_s26, [#allocation9], %s1451_s21, 0  }
  0x2d   : > { %s195_s3 = scalar_lea.hbm %s2282_s1, %s1449_s17  ;;  %s2293_s4 = sshll.u32 %s1960_s30, 6 }
  0x2e   : > { %s1651_s5 = scalar_select %p1932_p3, [#allocation0], [#allocation13] }
  0x2f   : > { %s187_s25 = scalar_lea.vmem [#allocation5], %s2293_s4  ;;  %s1855_s20 = smov 512  }
  0x30   : > { %s208_s6 = sshll.u32 %s187_s25, 4  ;;  %s200_s18 = sld [smem:[%s1651_s5]]   ;;  %s209_s6 = int_to_ptr.vmem [resolvable:$true] %s208_s6 }
  0x31   : > { %1652 = sst [smem:[#allocation11]] (%p1932_p3), %s1855_s20  ;;  %s1856_s19 = smov 256  }
  0x32   : > { %1653 = sst [smem:[#allocation11 + $0x1]] (%p1932_p3), %s1856_s19  ;;  %s1857_s8 = smov 2  }
  0x33   : > { %1654 = sst [smem:[#allocation11 + $0x2]] (%p1932_p3), %s1857_s8  ;;  %s1858_s17 = smov 128  }
  0x34   : > { %1655 = sst [smem:[#allocation11 + $0x3]] (%p1932_p3), %s1858_s17  ;;  %s1859_s21 = smov 8  }
  0x35   : > { %1656 = sst [smem:[#allocation11 + $0x4]] (%p1932_p3), %s1858_s17  ;;  %s184_s27 = scalar_lea.sflag [#allocation6], %s1960_s30 }
  0x36   : > { %s1456_s7 = sshll.u32 %s200_s18, 26  ;;  %1657 = sst [smem:[#allocation11 + $0x5]] (%p1932_p3), %s1859_s21 }
  0x37   : > { %s1457_s26 = sadd.s32 134217728, %s1456_s7  ;;  %s1860_s5 = smov 131072  }
  0x38   : > { %1658 = dma.general (%p1932_p3), %s195_s3, 1024, %s209_s6, %s184_s27, %s1860_s5, [#allocation11], %s1457_s26, 0  }
  0x39 PF: > { %p1458_p0 = scmp.ge.s32.totalorder %s1847_s16, 1  ;;  %p229_p1 = scmp.lt.s32.totalorder %s1847_s16, 5 }
  0x3b   : > { %p230_p2 = pnand %p1458_p0, %p229_p1 }
  0x3c   : > { %s2012_s4 = sand.u32 (!%p230_p2), 1, %s1823_s10  }
  0x3d   : > { %233 = sbr.rel (%p230_p2) target bundleno = 540 (0x21c), region = 28  ;;  %s1459_s25 = sshll.u32 (!%p230_p2), %s2012_s4, 6 }
  0x3e   : > { %s236_s18 = scalar_lea.sflag (!%p230_p2), [#allocation3], %s2012_s4  ;;  %s2016_s20 = scalar_lea.vmem (!%p230_p2), [#allocation2], %s1459_s25 }
  0x42   : > { %1806 = dma.done.wait (%p1940_p8), %s236_s18, 1024  }
  0x43   : > { %1808 = vsyncadd (%p1940_p8), %s236_s18, 4294966272  ;;  %s245_s22 = scalar_lea.sflag [#allocation6], %s2012_s4  ;;  %s2023_s30 = scalar_lea.vmem [#allocation5], %s1459_s25 }
  0x44   : > { %1810 = dma.done.wait (%p1940_p8), %s245_s22, 1024  }
  0x45   : > { %1812 = vsyncadd (%p1940_p8), %s245_s22, 4294966272  ;;  %v292_v0 = vlaneseq  ;;  %v1861_v1 = vmov 0.0   ;;  %vm1862_vm0 = vmmov 0   ;;  %v277_v7 = vld [vmem:[%s2016_s20 + $0x8] sm:$0xff]  ;;  %v279_v8 = vld [vmem:[%s2016_s20 + $0x18] sm:$0xff]  ;;  %vm346_vm1 = vcmask 261120  }
  0x46   : > { %1535 = vmatprep.subr.mxu0 %v1861_v1  ;;  %1539 = vmatprep.mubr.msk.f32.mxu0 %vm1862_vm0, %v1861_v1  ;;  %v281_v9 = vld [vmem:[%s2016_s20 + $0x28] sm:$0xff]  ;;  %v283_v10 = vld [vmem:[%s2016_s20 + $0x38] sm:$0xff]  ;;  %v276_v17 = vld [vmem:[%s2016_s20] sm:$0xff]  ;;  %vm361_vm2 = vcmask 130048   ;;  %s1461_s23 = sshll.u32 %s2012_s4, 1  ;;  %s1483_s3 = sshll.u32 %s1835_s13, 1 }
  0x47   : > { %1542 = vmatprep.subr.mxu1 %v1861_v1  ;;  %v2033_v2 = vshrl.u32 %v292_v0, 7  ;;  %1546 = vmatprep.mubr.msk.f32.mxu1 %vm1862_vm0, %v1861_v1  ;;  %v2038_v4 = vand.u32 127, %v292_v0  ;;  %v285_v11 = vld [vmem:[%s2023_s30 + $0x8] sm:$0xff]  ;;  %v287_v12 = vld [vmem:[%s2023_s30 + $0x18] sm:$0xff]  ;;  %v278_v20 = vld [vmem:[%s2016_s20 + $0x10] sm:$0xff]  ;;  %s1326_s6 = sadd.s32 %s1831_s12, %s1483_s3  ;;  %s273_s8 = scalar_lea.vmem [#allocation7], %s1461_s23 }
  0x48   : > { %v289_v13 = vld [vmem:[%s2023_s30 + $0x28] sm:$0xff]  ;;  %v291_v14 = vld [vmem:[%s2023_s30 + $0x38] sm:$0xff]  ;;  %v331_v15 = vsub.f32 %v277_v7, %v285_v11  ;;  %v333_v16 = vsub.f32 %v279_v8, %v287_v12  ;;  %v280_v21 = vld [vmem:[%s2016_s20 + $0x20] sm:$0xff]  ;;  %s1484_s19 = sshll.u32 %s1326_s6, 5  ;;  %s1330_s17 = sshll.u32 %s273_s8, 4  ;;  %s1331_s17 = int_to_ptr.vmem [resolvable:$true] %s1330_s17 }
  0x49   : > { %v298_v3 = vadd.s32 1, %v2033_v2  ;;  %v296_v5 = vmul.u32 8, %v2033_v2  ;;  %v335_v18 = vsub.f32 %v281_v9, %v289_v13  ;;  %v337_v19 = vsub.f32 %v283_v10, %v291_v14  ;;  %v282_v22 = vld [vmem:[%s2016_s20 + $0x30] sm:$0xff]  ;;  %v284_v27 = vld [vmem:[%s2023_s30] sm:$0xff]  ;;  %s1328_s26 = scalar_lea.hbm %s2283_s2, %s1484_s19  ;;  %s1315_s27 = scalar_lea.sflag [#allocation4], %s2012_s4 }
  0x4a   : > { %v339_v25 = vand.u32 2147483647, %v331_v15  ;;  %v341_v26 = vand.u32 2147483647, %v333_v16  ;;  %v286_v28 = vld [vmem:[%s2023_s30 + $0x10] sm:$0xff]  ;;  %v288_v31 = vld [vmem:[%s2023_s30 + $0x20] sm:$0xff]  ;;  %v330_v33 = vsub.f32 %v276_v17, %v284_v27 }
  0x4b   : > { %v299_v6 = vmul.u32 8, %v298_v3  ;;  %vm2054_vm3 = vcmp.ge.s32.totalorder %v2038_v4, %v296_v5  ;;  %v343_v29 = vand.u32 2147483647, %v335_v18  ;;  %v345_v30 = vand.u32 2147483647, %v337_v19  ;;  %v290_v32 = vld [vmem:[%s2023_s30 + $0x30] sm:$0xff] }
  0x4c   : > { %v332_v34 = vsub.f32 %v278_v20, %v286_v28  ;;  %v354_v35 = vsel %vm346_vm1, %v339_v25, 0.0  ;;  %v355_v36 = vsel %vm346_vm1, %v341_v26, 0.0  ;;  %v334_v37 = vsub.f32 %v280_v21, %v288_v31  ;;  %s1747_s13 = scalar_lea.vmem %s1331_s17, 32  ;;  %s1864_s12 = smov [#allocation7]  }
  0x4d   : > { %vm2059_vm4 = vcmp.lt.s32.totalorder %v2038_v4, %v299_v6  ;;  %v336_v38 = vsub.f32 %v282_v22, %v290_v32  ;;  %v356_v39 = vadd.f32 %v355_v36, %v354_v35  ;;  %v357_v40 = vsel %vm346_vm1, %v343_v29, 0.0  ;;  %p1748_p3 = scmp.ne.s32.totalorder %s1331_s17, %s1747_s13  ;;  %s1751_s5 = sshll.u32 %s1864_s12, 4  ;;  %s1752_s5 = int_to_ptr.vmem [resolvable:$false] %s1751_s5 }
  0x4e   : > { %vm301_vm5 = vmand %vm2054_vm3, %vm2059_vm4  ;;  %v359_v41 = vsel %vm346_vm1, %v345_v30, 0.0  ;;  %v338_v42 = vand.u32 2147483647, %v330_v33  ;;  %v340_v43 = vand.u32 2147483647, %v332_v34  ;;  %v312_v10 = vadd.s32 1, %v2038_v4  ;;  %p1754_p6 = scmp.lt.s32.totalorder %s1331_s17, %s1752_s5 }
  0x4f   : > { %v342_v44 = vand.u32 2147483647, %v334_v37  ;;  %v344_v45 = vand.u32 2147483647, %v336_v38  ;;  %v358_v46 = vadd.f32 %v357_v40, %v356_v39  ;;  %v1462_v48 = vsel %vm301_vm5, 1.0, %v1861_v1  ;;  %p1749_p4 = pnand %p1748_p3, %p1944_p9  ;;  %s1753_s25 = scalar_lea.vmem %s1752_s5, 64 }
  0x50   : > { %v347_v47 = vsel %vm346_vm1, %v338_v42, 0.0  ;;  %v348_v49 = vsel %vm346_vm1, %v340_v43, 0.0  ;;  %v363_v51 = vsel %vm361_vm2, %v1462_v48, 0  ;;  %v306_v11 = vadd.s32 24, %v2033_v2  ;;  %p1755_p7 = scmp.lt.s32.totalorder %s1753_s25, %s1747_s13 }
  0x51   : > { %v350_v50 = vsel %vm346_vm1, %v342_v44, 0.0  ;;  %v360_v52 = vadd.f32 %v359_v41, %v358_v46  ;;  %v349_v53 = vadd.f32 %v348_v49, %v347_v47  ;;  %v433_v54 = vsub.f32 %v363_v51, %v363_v51  ;;  %p1750_p5 = pneg %p1749_p4 }
  0x52   : > { %v352_v55 = vsel %vm346_vm1, %v344_v45, 0.0  ;;  %v307_v12 = vmul.u32 8, %v2038_v4  ;;  %v313_v13 = vmul.u32 8, %v312_v10  ;;  %v305_v14 = vadd.s32 16, %v2033_v2  ;;  %p1756_p8 = por %p1755_p7, %p1754_p6 }
  0x53   : > { %v394_v56 = vand.u32 4294901760, %v360_v52  ;;  %v351_v57 = vadd.f32 %v350_v50, %v349_v53  ;;  %v434_v58 = vand.u32 4294901760, %v433_v54  ;;  %v304_v17 = vadd.s32 8, %v2033_v2 }
  0x54   : > { %vm311_vm6 = vcmp.ge.s32.totalorder %v306_v11, %v307_v12  ;;  %vm317_vm7 = vcmp.lt.s32.totalorder %v306_v11, %v313_v13  ;;  %vm310_vm9 = vcmp.ge.s32.totalorder %v305_v14, %v307_v12  ;;  %vm316_vm10 = vcmp.lt.s32.totalorder %v305_v14, %v313_v13  ;;  %p1757_p10 = pnand %p1756_p8, %p1750_p5 }
  0x55   : > { %1536 = vmatpush3.msra.mxu0 %v394_v56  ;;  %v353_v59 = vadd.f32 %v352_v55, %v351_v57  ;;  %v435_v60 = vsub.f32 %v433_v54, %v434_v58  ;;  %v472_v61 = vsub.f32 %v360_v52, %v394_v56  ;;  %vm2112_vm8 = vmand %vm311_vm6, %vm317_vm7  ;;  %vm309_vm12 = vcmp.ge.s32.totalorder %v304_v17, %v307_v12 }
  0x56   : > { %1537 = vmatprep.subr.mxu0 %v1861_v1  ;;  %v1466_v16 = vsel %vm2112_vm8, 1.0, %v1861_v1  ;;  %vm2122_vm11 = vmand %vm310_vm9, %vm316_vm10  ;;  %vm315_vm13 = vcmp.lt.s32.totalorder %v304_v17, %v313_v13  ;;  %vm308_vm15 = vcmp.ge.s32.totalorder %v2033_v2, %v307_v12  ;;  %v1863_v38 = vmov 1.0  }
  0x57   : > { %v397_v62 = vand.u32 4294901760, %v353_v59  ;;  %v436_v63 = vand.u32 4294901760, %v435_v60  ;;  %v473_v0 = vand.u32 4294901760, %v472_v61  ;;  %v2120_v18 = vsub.f32 %v1466_v16, %v1466_v16  ;;  %vm2132_vm14 = vmand %vm309_vm12, %vm315_vm13 }
  0x58   : > { %v1465_v19 = vsel %vm2122_vm11, 1.0, %v1861_v1  ;;  %v1464_v23 = vsel %vm2132_vm14, 1.0, %v1861_v1 }
  0x59   : > { %1538 = vmatpush3.msra.mxu0 %v397_v62  ;;  %v474_v3 = vsub.f32 %v472_v61, %v473_v0  ;;  %v479_v5 = vsub.f32 %v353_v59, %v397_v62  ;;  %v933_v20 = vand.u32 4294901760, %v2120_v18  ;;  %v2130_v21 = vsub.f32 %v1465_v19, %v1465_v19 }
  0x5a   : > { %1540 = vmatmul.mubr.f32.vlgmr.msra.gmra.mxu0 %v436_v63  ;;  %1549 = vmatprep.subr.mxu0 %v1861_v1  ;;  %v2145_v26 = vsub.f32 %v1464_v23, %v1464_v23 }
  0x5b   : > { %v475_v6 = vand.u32 4294901760, %v474_v3  ;;  %1550 = vmatpush3.msra.mxu0 %v472_v61  ;;  %v480_v7 = vand.u32 4294901760, %v479_v5  ;;  %1553 = vmatprep.mubr.msk.f32.mxu0 %vm1862_vm0, %v1861_v1  ;;  %v934_v24 = vsub.f32 %v2120_v18, %v933_v20  ;;  %v940_v25 = vand.u32 4294901760, %v2130_v21 }
  0x5c   : > { %1551 = vmatprep.subr.mxu0 %v1861_v1  ;;  %v947_v30 = vand.u32 4294901760, %v2145_v26 }
  0x5d   : > { %1543 = vmatpush3.msra.mxu1 %v475_v6  ;;  %v481_v8 = vsub.f32 %v479_v5, %v480_v7  ;;  %1552 = vmatpush3.msra.mxu0 %v479_v5  ;;  %v935_v29 = vand.u32 4294901760, %v934_v24 }
  0x5e   : > { %1544 = vmatprep.subr.mxu1 %v1861_v1  ;;  %1554 = vmatmul.mubr.f32.vlgmr.msra.gmra.mxu0 %v433_v54  ;;  %v948_v33 = vsub.f32 %v2145_v26, %v947_v30 }
  0x5f   : > { %v482_v9 = vand.u32 4294901760, %v481_v8  ;;  %1563 = vmatprep.subr.mxu0 %v1861_v1  ;;  %1567 = vmatprep.mubr.msk.f32.mxu0 %vm1862_vm0, %v1861_v1 }
  0x60   : > { %1564 = vmatpush3.msra.mxu0 %v473_v0  ;;  %v949_v35 = vand.u32 4294901760, %v948_v33 }
  0x61   : > { %1545 = vmatpush3.msra.mxu1 %v482_v9  ;;  %1565 = vmatprep.subr.mxu0 %v1861_v1 }
  0x62   : > { %1547 = vmatmul.mubr.msk.f32.vlgmr.msra.gmra.mxu1 %vm361_vm2, %v1462_v48  ;;  %1556 = vmatprep.subr.mxu1 %v1861_v1 }
  0x63   : > { %1557 = vmatpush3.msra.mxu1 %v394_v56  ;;  %1560 = vmatprep.mubr.msk.f32.mxu1 %vm1862_vm0, %v1861_v1 }
  0x64   : > { %1558 = vmatprep.subr.mxu1 %v1861_v1  ;;  %1566 = vmatpush3.msra.mxu0 %v480_v7 }
  0x65   : > { %1559 = vmatpush3.msra.mxu1 %v397_v62  ;;  %1568 = vmatmul.mubr.msk.f32.vlgmr.msra.gmra.mxu0 %vm361_vm2, %v1462_v48 }
  0x66   : > { %1561 = vmatmul.mubr.f32.vlgmr.msra.gmra.mxu1 %v434_v58  ;;  %1570 = vmatprep.subr.mxu1 %v1861_v1 }
  0x67   : > { %1571 = vmatpush3.msra.mxu1 %v394_v56  ;;  %1574 = vmatprep.mubr.msk.f32.mxu1 %vm1862_vm0, %v1861_v1 }
  0x68   : > { %1572 = vmatprep.subr.mxu1 %v1861_v1  ;;  %1577 = vmatprep.subr.mxu0 %v1861_v1 }
  0x69   : > { %1573 = vmatpush3.msra.mxu1 %v397_v62  ;;  %1585 = vmatprep.mubr.msk.f32.mxu0 %vm1862_vm0, %v1861_v1 }
  0x6a   : > { %1575 = vmatmul.mubr.msk.f32.vlgmr.msra.gmra.mxu1 %vm361_vm2, %v1462_v48  ;;  %1588 = vmatprep.subr.mxu1 %v1861_v1  ;;  %vm314_vm2 = vcmp.lt.s32.totalorder %v2033_v2, %v313_v13  ;;  %v941_v2 = vsub.f32 %v2130_v21, %v940_v25 }
  0x6b   : > { %1596 = vmatprep.mubr.msk.f32.mxu1 %vm1862_vm0, %v1861_v1  ;;  %vm2147_vm3 = vmand %vm308_vm15, %vm314_vm2  ;;  %1589 = vmatpush3.msra.mxu1 %v935_v29 }
  0x6c   : > { %v1463_v28 = vsel %vm2147_vm3, 1.0, %v1861_v1  ;;  %v942_v32 = vand.u32 4294901760, %v941_v2  ;;  %1590 = vmatprep.subr.mxu1 %v1861_v1  ;;  %1578 = vmatpush3.msk.msra.mxu0 %vm2112_vm8, %v1863_v38 }
  0x6d   : > { %v2158_v31 = vsub.f32 %v1463_v28, %v1463_v28  ;;  %1579 = vmatprep.subr.mxu0 %v1861_v1 }
  0x6e   : > { %1591 = vmatpush3.msra.mxu1 %v942_v32  ;;  %1580 = vmatpush3.msk.msra.mxu0 %vm2122_vm11, %v1863_v38 }
  0x6f   : > { %v954_v34 = vand.u32 4294901760, %v2158_v31  ;;  %1592 = vmatprep.subr.mxu1 %v1861_v1  ;;  %1581 = vmatprep.subr.mxu0 %v1861_v1 }
  0x70   : > { %1593 = vmatpush3.msra.mxu1 %v949_v35  ;;  %1582 = vmatpush3.msk.msra.mxu0 %vm2132_vm14, %v1863_v38 }
  0x71   : > { %v955_v36 = vsub.f32 %v2158_v31, %v954_v34  ;;  %1594 = vmatprep.subr.mxu1 %v1861_v1  ;;  %1583 = vmatprep.subr.mxu0 %v1861_v1 }
  0x72   : > { %1584 = vmatpush3.msk.msra.mxu0 %vm2147_vm3, %v1863_v38 }
  0x73   : > { %v956_v37 = vand.u32 4294901760, %v955_v36  ;;  %1599 = vmatprep.subr.mxu0 %v1861_v1 }
  0x75   : > { %1595 = vmatpush3.msra.mxu1 %v956_v37 }
  0x76   : > { %1610 = vmatprep.subr.mxu1 %v1861_v1 }
 0x11a   : > { %v438_v39 = vpop.f32.mrf.mxu0 }
 0x11c   : > { %v1541_v40 = vpop.f32.mrf.mxu0 }
 0x11e   : > { %v595_v41 = vpop.f32.mrf.mxu0 }
 0x120   : > { %v1555_v42 = vpop.f32.mrf.mxu0 }
 0x122   : > { %v519_v43 = vpop.f32.mrf.mxu1 }
 0x123   : > { %v520_v44 = vadd.f32 %v519_v43, %v438_v39 }
 0x124   : > { %v1548_v45 = vpop.f32.mrf.mxu1 }
 0x125   : > { %v596_v46 = vadd.f32 %v595_v41, %v520_v44  ;;  %v747_v47 = vpop.f32.mrf.mxu0 }
 0x126   : > { %v670_v48 = vpop.f32.mrf.mxu1 }
 0x127   : > { %v671_v49 = vadd.f32 %v670_v48, %v596_v46  ;;  %v1569_v50 = vpop.f32.mrf.mxu0 }
 0x128   : > { %v1562_v51 = vpop.f32.mrf.mxu1 }
 0x129   : > { %v748_v52 = vadd.f32 %v747_v47, %v671_v49 }
 0x12a   : > { %v820_v53 = vpop.f32.mrf.mxu1 }
 0x12b   : > { %v821_v54 = vadd.f32 %v820_v53, %v748_v52 }
 0x12c   : > { %v1576_v55 = vpop.f32.mrf.mxu1 }
 0x12d   : > { %v825_v56 = vsel %vm346_vm1, %v821_v54, 0 }
 0x12e   : > { %v896_v57 = vand.u32 4294901760, %v825_v56 }
 0x130   : > { %v897_v58 = vsub.f32 %v825_v56, %v896_v57  ;;  %1597 = vmatmul.mubr.f32.vlgmr.msra.gmra.mxu1 %v896_v57 }
 0x131   : > { %1611 = vmatpush3.msk.msra.mxu1 %vm2112_vm8, %v1863_v38  ;;  %1618 = vmatprep.mubr.msk.f32.mxu1 %vm1862_vm0, %v1861_v1 }
 0x132   : > { %1612 = vmatprep.subr.mxu1 %v1861_v1  ;;  %v898_v59 = vand.u32 4294901760, %v897_v58 }
 0x133   : > { %1613 = vmatpush3.msk.msra.mxu1 %vm2122_vm11, %v1863_v38 }
 0x134   : > { %1614 = vmatprep.subr.mxu1 %v1861_v1  ;;  %v899_v60 = vsub.f32 %v897_v58, %v898_v59 }
 0x135   : > { %1615 = vmatpush3.msk.msra.mxu1 %vm2132_vm14, %v1863_v38 }
 0x136   : > { %1616 = vmatprep.subr.mxu1 %v1861_v1  ;;  %v900_v61 = vand.u32 4294901760, %v899_v60 }
 0x137   : > { %1617 = vmatpush3.msk.msra.mxu1 %vm2147_vm3, %v1863_v38 }
 0x138   : > { %1619 = vmatmul.mubr.f32.vlgmr.msra.gmra.mxu1 %v898_v59  ;;  %1632 = vmatprep.subr.mxu1 %v1861_v1 }
 0x139   : > { %1586 = vmatmul.mubr.f32.vlgmr.msra.gmra.mxu0 %v900_v61  ;;  %1633 = vmatpush3.msk.msra.mxu1 %vm2112_vm8, %v1863_v38 }
 0x13a   : > { %1600 = vmatpush3.msra.mxu0 %v2120_v18  ;;  %1634 = vmatprep.subr.mxu1 %v1861_v1 }
 0x13b   : > { %1601 = vmatprep.subr.mxu0 %v1861_v1  ;;  %1635 = vmatpush3.msk.msra.mxu1 %vm2122_vm11, %v1863_v38 }
 0x13c   : > { %1602 = vmatpush3.msra.mxu0 %v2130_v21  ;;  %1636 = vmatprep.subr.mxu1 %v1861_v1 }
 0x13d   : > { %1603 = vmatprep.subr.mxu0 %v1861_v1  ;;  %1637 = vmatpush3.msk.msra.mxu1 %vm2132_vm14, %v1863_v38 }
 0x13e   : > { %1604 = vmatpush3.msra.mxu0 %v2145_v26  ;;  %1638 = vmatprep.subr.mxu1 %v1861_v1 }
 0x13f   : > { %1605 = vmatprep.subr.mxu0 %v1861_v1  ;;  %1607 = vmatprep.mubr.msk.f32.mxu0 %vm1862_vm0, %v1861_v1 }
 0x140   : > { %1606 = vmatpush3.msra.mxu0 %v2158_v31  ;;  %1639 = vmatpush3.msk.msra.mxu1 %vm2147_vm3, %v1863_v38 }
 0x141   : > { %1640 = vmatprep.mubr.msk.f32.mxu1 %vm1862_vm0, %v1861_v1  ;;  %1608 = vmatmul.mubr.f32.vlgmr.msra.gmra.mxu0 %v897_v58 }
 0x142   : > { %1621 = vmatprep.subr.mxu0 %v1861_v1  ;;  %1641 = vmatmul.mubr.f32.vlgmr.msra.gmra.mxu1 %v896_v57 }
 0x143   : > { %1622 = vmatpush3.msra.mxu0 %v933_v20  ;;  %1629 = vmatprep.mubr.msk.f32.mxu0 %vm1862_vm0, %v1861_v1  ;;  %vm1312_vm0 = vcmask 25600  }
 0x144   : > { %1623 = vmatprep.subr.mxu0 %v1861_v1 }
 0x145   : > { %1624 = vmatpush3.msra.mxu0 %v940_v25 }
 0x146   : > { %1625 = vmatprep.subr.mxu0 %v1861_v1 }
 0x147   : > { %1626 = vmatpush3.msra.mxu0 %v947_v30 }
 0x148   : > { %1627 = vmatprep.subr.mxu0 %v1861_v1 }
 0x149   : > { %1628 = vmatpush3.msra.mxu0 %v954_v34 }
 0x14a   : > { %1630 = vmatmul.mubr.f32.vlgmr.msra.gmra.mxu0 %v896_v57 }
 0x1f0   : > { %v993_v62 = vpop.f32.mrf.mxu1 }
 0x1f2   : > { %v1598_v63 = vpop.f32.mrf.mxu1 }
 0x1f8   : > { %v1150_v0 = vpop.f32.mrf.mxu1 }
 0x1f9   : > { %v902_v3 = vpop.f32.mrf.mxu0 }
 0x1fa   : > { %v1620_v5 = vpop.f32.mrf.mxu1  ;;  %v994_v9 = vadd.f32 %v993_v62, %v902_v3 }
 0x1fb   : > { %v1587_v6 = vpop.f32.mrf.mxu0 }
 0x201   : > { %v1073_v7 = vpop.f32.mrf.mxu0 }
 0x202   : > { %v1308_v8 = vpop.f32.mrf.mxu1  ;;  %v1074_v1 = vadd.f32 %v1073_v7, %v994_v9 }
 0x203   : > { %v1609_v10 = vpop.f32.mrf.mxu0 }
 0x204   : > { %v1642_v11 = vpop.f32.mrf.mxu1  ;;  %v1151_v12 = vadd.f32 %v1150_v0, %v1074_v1 }
 0x20a   : > { %v1233_v13 = vpop.f32.mrf.mxu0 }
 0x20b   : > { %v1234_v14 = vadd.f32 %v1233_v13, %v1151_v12 }
 0x20c   : > { %v1631_v15 = vpop.f32.mrf.mxu0 }
 0x20d   : > { %v1309_v16 = vadd.f32 %v1308_v8, %v1234_v14 }
 0x20f   : > { %1313 = vst.msk [vmem:[%s273_s8] sm:$0x3] %vm1312_vm0, %v1309_v16 }
 0x210   : > { %1760 = shalt.err (!%p1757_p10)
}
 0x211   : > { %s1761_s18 = scalar_lea.hbm %s1328_s26, 32  ;;  %s1765_s22 = scalar_lea.hbm %s2283_s2, 128 }
 0x212   : > { %p1762_p11 = scmp.ne.s32.totalorder %s1328_s26, %s1761_s18  ;;  %p1766_p1 = scmp.lt.s32.totalorder %s1328_s26, %s2283_s2 }
 0x213   : > { %p1767_p2 = scmp.lt.s32.totalorder %s1765_s22, %s1761_s18 }
 0x214   : > { %p1763_p13 = pnand %p1762_p11, %p1944_p9 }
 0x215   : > { %p1768_p3 = por %p1767_p2, %p1766_p1 }
 0x216   : > { %p1764_p0 = pneg %p1763_p13 }
 0x218   : > { %p1769_p4 = pnand %p1768_p3, %p1764_p0 }
 0x21a   : > { %1772 = shalt.err (!%p1769_p4)
}
 0x21b   : > { %1661 = dma.vmem_to_hbm [thread:$0]  (%p1944_p9), %s1331_s17, 32, %s1328_s26, %s1315_s27  }
 0x21c PF: > { %p1667_p5 = scmp.ge.s32.totalorder %s1847_s16, 2  ;;  %s1342_s3 = sand.u32 1, %s1819_s9  }
 0x21d   : > { %s1343_s6 = scalar_lea.sflag [#allocation4], %s1342_s3 }
 0x21e   : > { %p1664_p6 = pnand %p1667_p5, %p1951_p12 }
 0x220   : > { %p1665_p7 = pneg %p1664_p6 }
 0x222   : > { %1814 = dma.done.wait (%p1665_p7), %s1343_s6, 32  }
 0x223   : > { %1816 = vsyncadd (%p1665_p7), %s1343_s6, 4294967264  ;;  %s21_s16 = sadd.s32 1, %s1847_s16   ;;  %s2306_s24 = sld [smem:[#allocation17_spill]] }
 0x224   : > { %p18_p8 = scmp.ge.s32.totalorder %s21_s16, 6   ;;  %s2307_s19 = sld [smem:[#allocation18_spill]] }
 0x225   : > { %s2308_s9 = smov %s1823_s10  ;;  %s2309_s10 = smov %s1827_s11 }
 0x226   : > { %s2310_s11 = smov %s1956_s29  ;;  %s2311_s12 = smov %s1839_s14 }
 0x227   : > { %s2312_s13 = smov %s1843_s15  ;;  %20 = sbr.rel (!%p18_p8) target bundleno = 9 (0x9), region = 96 }
 0x229   : > { %s2313_s14 = smov %s2306_s24 }
 0x22a   : > { %s2314_s15 = smov %s2307_s19 }
 0x22c   :  { %1348 = vsyncpa [#allocation3], 1 }
 0x22d   :  { %1350 = vsyncpa [#allocation3 + $0x1], 1 }
 0x22e   :  { %1351 = vsyncpa [#allocation6], 1 }
 0x22f   :  { %1353 = vsyncpa [#allocation6 + $0x1], 1 }
 0x230   :  { %1354 = vsyncpa [#allocation4], 1 }
 0x231   :  { %1356 = vsyncpa [#allocation4 + $0x1], 1 }

</bundles_post_ra>
